<compile_context>
chip_gen: v6e
topology: v6e:2x2x1
jax: 0.10.0
libtpu: 0.0.40
codegen_flags: <defaults>
</compile_context>

<pallas_src>
import functools

import jax
import jax.numpy as jnp
from jax.experimental import pallas as pl
from jax.experimental.pallas import tpu as pltpu


def _round_up(x, m):
    return ((x + m - 1) // m) * m


def _decoder_kernel(num_weights, u_ref, v_ref, wt_ref, wc_ref, o_ref):
    """One edge tile, edges on the lane axis.

    u_ref  : (D, TE)      gathered user features (f32 or bf16)
    v_ref  : (D, TE)      gathered item features (f32 or bf16)
    wt_ref : (nw*D, D)    rows [i*D:(i+1)*D] = weight[i].T (same dtype as u)
    wc_ref : (NCp, nw*D)  wc_ref[c, i*D + d] = weight_classifier[i, c] (f32)
    o_ref  : (NCp, TE)    relu(classifier output), f32
    """
    # MXU 1: t[i*D + d', e] = (u_e @ weight[i])[d'] -- one fused matmul for all
    # num_weights bases (K = D, N = TE lane-dense), f32 accumulation.
    t = jnp.dot(wt_ref[...], u_ref[...], preferred_element_type=jnp.float32)

    # Per-basis elementwise product with v (VPU, f32): p[i*D+d', e] = t * v[d', e].
    v = v_ref[...].astype(jnp.float32)
    v_rep = jnp.concatenate([v] * num_weights, axis=0)            # (nw*D, TE)
    p = t * v_rep

    # MXU 2: fuses the per-basis feature reduction and the classifier matmul:
    # o[c, e] = sum_i wc[i, c] * sum_d p[i*D + d, e].
    o = jnp.dot(wc_ref[...], p, preferred_element_type=jnp.float32)  # (NCp, TE)
    o_ref[...] = jnp.maximum(o, 0.0)


def decoder_forward(user_inputs, item_inputs, user_indices, item_indices,
                    weight, weight_classifier, *, tile_edges=4096,
                    input_dtype=jnp.float32):
    """JAX wrapper mirroring Decoder.forward (dropout p=0).

    input_dtype=jnp.bfloat16 halves input HBM reads / VMEM buffers (f32
    accumulation on the MXU; results differ from f32 only by input rounding).
    """
    num_weights, input_dim, _ = weight.shape
    num_classes = weight_classifier.shape[1]
    num_edges = int(user_indices.shape[0])

    # --- edge tiling: edges on the 128-lane axis ---------------------------
    e128 = _round_up(max(num_edges, 1), 128)
    te = min(int(tile_edges), e128)
    if e128 > 128:  # >= 2 grid steps so both v7x TensorCores get work
        te = min(te, _round_up(e128 // 2, 128))
    e_pad = _round_up(max(num_edges, 1), te)
    grid = (e_pad // te,)

    # --- gather directly into the transposed (D, E) lane-dense layout ------
    u_t = jnp.take(user_inputs.T.astype(input_dtype), user_indices, axis=1)
    v_t = jnp.take(item_inputs.T.astype(input_dtype), item_indices, axis=1)
    if e_pad != num_edges:
        u_t = jnp.pad(u_t, ((0, 0), (0, e_pad - num_edges)))
        v_t = jnp.pad(v_t, ((0, 0), (0, e_pad - num_edges)))

    # --- parameter repacking ------------------------------------------------
    # wt[i*D + d', d] = weight[i, d, d']  ->  dot(wt, u_t) fuses all u @ W_i.
    wt = jnp.transpose(weight, (0, 2, 1)).reshape(
        num_weights * input_dim, input_dim).astype(input_dtype)
    # Expanded classifier: wc_exp_t[c, i*D + d] = weight_classifier[i, c];
    # zero-padded sublane rows give relu(0) = 0 and are sliced off below.
    nc_pad = _round_up(num_classes, 8)
    wc_exp = jnp.repeat(weight_classifier.astype(jnp.float32), input_dim, axis=0)
    wc_exp_t = jnp.zeros((nc_pad, num_weights * input_dim), jnp.float32)
    wc_exp_t = wc_exp_t.at[:num_classes, :].set(wc_exp.T)

    kernel = functools.partial(_decoder_kernel, num_weights)

    out_t = pl.pallas_call(
        kernel,
        out_shape=jax.ShapeDtypeStruct((nc_pad, e_pad), jnp.float32),
        grid=grid,
        in_specs=[
            pl.BlockSpec((input_dim, te), lambda i: (0, i)),
            pl.BlockSpec((input_dim, te), lambda i: (0, i)),
            pl.BlockSpec((num_weights * input_dim, input_dim), lambda i: (0, 0)),
            pl.BlockSpec((nc_pad, num_weights * input_dim), lambda i: (0, 0)),
        ],
        out_specs=pl.BlockSpec((nc_pad, te), lambda i: (0, i)),
        compiler_params=pltpu.CompilerParams(
            dimension_semantics=("parallel",),
            # Let XLA fuse the gather + transpose + cast producers straight
            # into the pallas_call operand reads for u_t / v_t.
            allow_input_fusion=[True, True, False, False],
            # Double-buffered lane-dense blocks + (nw*D, TE) f32 temporaries
            # are ~8-10 MiB at te=4096; raise v5e/v6e's 16 MiB scoped default
            # (matches v7x's 32 MiB default, well under its 64 MiB physical).
            vmem_limit_bytes=32 * 1024 * 1024,
        ),
    )(u_t, v_t, wt, wc_exp_t)

    # Slice off class / edge padding, return the module's (E, NC) orientation.
    return out_t[:num_classes, :num_edges].T


def _reference(user_inputs, item_inputs, user_indices, item_indices,
               weight, weight_classifier):
    u = user_inputs[user_indices]
    v = item_inputs[item_indices]
    basis = jnp.stack(
        [jnp.sum((u @ weight[i]) * v, axis=1) for i in range(weight.shape[0])],
        axis=1)
    return jax.nn.relu(basis @ weight_classifier)


if __name__ == "__main__":
    # Small, Decoder-consistent shapes.
    input_dim = 32
    num_weights = 4
    num_classes = 8
    num_users = 16
    num_items = 16

    key = jax.random.PRNGKey(0)
    k_u, k_i, k_w, k_wc = jax.random.split(key, 4)

    user_inputs = jax.random.normal(k_u, (num_users, input_dim), jnp.float32)
    item_inputs = jax.random.normal(k_i, (num_items, input_dim), jnp.float32)

    # Deterministic kaiming-uniform-style init (bound = sqrt(6 / fan_in)).
    bound_w = (6.0 / input_dim) ** 0.5
    weight = jax.random.uniform(k_w, (num_weights, input_dim, input_dim),
                                jnp.float32, -bound_w, bound_w)
    bound_c = (6.0 / num_classes) ** 0.5
    weight_classifier = jax.random.uniform(k_wc, (num_weights, num_classes),
                                           jnp.float32, -bound_c, bound_c)

    # bf16-rounded copies so the bf16 fast path can be checked fairly
    # (identical quantisation applied to the reference inputs).
    ui_q = user_inputs.astype(jnp.bfloat16).astype(jnp.float32)
    ii_q = item_inputs.astype(jnp.bfloat16).astype(jnp.float32)
    w_q = weight.astype(jnp.bfloat16).astype(jnp.float32)

    ok = True
    # 100 exercises the ragged-pad path; 300 exercises the >=2-grid-step
    # (dual-TensorCore) split plus ragged padding.
    for num_edges in (128, 100, 300):
        ku, ki = jax.random.split(jax.random.fold_in(key, num_edges))
        user_indices = jax.random.randint(ku, (num_edges,), 0, num_users, jnp.int32)
        item_indices = jax.random.randint(ki, (num_edges,), 0, num_items, jnp.int32)

        # f32 path (exact, default).
        out = decoder_forward(user_inputs, item_inputs, user_indices, item_indices,
                              weight, weight_classifier, input_dtype=jnp.float32)
        out = jax.block_until_ready(out)
        ref = _reference(user_inputs, item_inputs, user_indices, item_indices,
                         weight, weight_classifier)
        ok = ok and (out.shape == (num_edges, num_classes))
        ok = ok and bool(jnp.allclose(out, ref, atol=1e-3, rtol=1e-3))

        # bf16-input path (f32 accumulation on the MXU).
        out16 = decoder_forward(user_inputs, item_inputs, user_indices, item_indices,
                                weight, weight_classifier, input_dtype=jnp.bfloat16)
        out16 = jax.block_until_ready(out16)
        ref16 = _reference(ui_q, ii_q, user_indices, item_indices, w_q,
                           weight_classifier)
        ok = ok and (out16.shape == (num_edges, num_classes))
        ok = ok and bool(jnp.allclose(out16, ref16, atol=1e-2, rtol=1e-2))

    assert ok
    print("KERNEL_OK")
</pallas_src>

<mosaic_0001>
module attributes {stable_mosaic.version = 11 : i64} {
  func.func @_decoder_kernel(%arg0: i32, %arg1: memref<32x128xf32, #tpu.memory_space<vmem>>, %arg2: memref<32x128xf32, #tpu.memory_space<vmem>>, %arg3: memref<128x32xf32, #tpu.memory_space<vmem>>, %arg4: memref<8x128xf32, #tpu.memory_space<vmem>>, %arg5: memref<8x128xf32, #tpu.memory_space<vmem>>) attributes {dimension_semantics = [#tpu.dimension_semantics<parallel>], iteration_bounds = array<i64: 1>, scalar_prefetch = 0 : i64, scratch_operands = 0 : i64, tpu.core_type = #tpu.core_type<tc>, window_params = [{transform_indices = @transform_0, window_bounds = array<i64: 32, 128>}, {transform_indices = @transform_1, window_bounds = array<i64: 32, 128>}, {pipeline_mode = #tpu.pipeline_mode<synchronous>, transform_indices = @transform_2, window_bounds = array<i64: 128, 32>}, {pipeline_mode = #tpu.pipeline_mode<synchronous>, transform_indices = @transform_3, window_bounds = array<i64: 8, 128>}, {transform_indices = @transform_4, window_bounds = array<i64: 8, 128>}]} {
    %c0 = arith.constant 0 : index
    %c0_0 = arith.constant 0 : index
    %0 = vector.load %arg3[%c0, %c0_0] : memref<128x32xf32, #tpu.memory_space<vmem>>, vector<128x32xf32>
    %c0_1 = arith.constant 0 : index
    %c0_2 = arith.constant 0 : index
    %1 = vector.load %arg1[%c0_1, %c0_2] : memref<32x128xf32, #tpu.memory_space<vmem>>, vector<32x128xf32>
    %cst = arith.constant dense<0.000000e+00> : vector<128x128xf32>
    %2 = tpu.matmul %0, %1, %cst {dimension_numbers = #tpu.dot_dimension_numbers<[1], [0], [0], [1], [0, 0, 1, 1], [], []>} : vector<128x32xf32>, vector<32x128xf32>, vector<128x128xf32> -> vector<128x128xf32>
    %c0_3 = arith.constant 0 : index
    %c0_4 = arith.constant 0 : index
    %3 = vector.load %arg2[%c0_3, %c0_4] : memref<32x128xf32, #tpu.memory_space<vmem>>, vector<32x128xf32>
    %4 = tpu.concatenate %3, %3, %3, %3 in 0 : vector<32x128xf32>, vector<32x128xf32>, vector<32x128xf32>, vector<32x128xf32> -> vector<128x128xf32>
    %5 = arith.mulf %2, %4 : vector<128x128xf32>
    %c0_5 = arith.constant 0 : index
    %c0_6 = arith.constant 0 : index
    %6 = vector.load %arg4[%c0_5, %c0_6] : memref<8x128xf32, #tpu.memory_space<vmem>>, vector<8x128xf32>
    %cst_7 = arith.constant dense<0.000000e+00> : vector<8x128xf32>
    %7 = tpu.matmul %6, %5, %cst_7 {dimension_numbers = #tpu.dot_dimension_numbers<[1], [0], [0], [1], [0, 0, 1, 1], [], []>} : vector<8x128xf32>, vector<128x128xf32>, vector<8x128xf32> -> vector<8x128xf32>
    %cst_8 = arith.constant 0.000000e+00 : f32
    %8 = vector.broadcast %cst_8 : f32 to vector<8x128xf32>
    %9 = arith.maximumf %7, %8 : vector<8x128xf32>
    %c0_9 = arith.constant 0 : index
    %c0_10 = arith.constant 0 : index
    %10 = vector.load %arg5[%c0_9, %c0_10] : memref<8x128xf32, #tpu.memory_space<vmem>>, vector<8x128xf32>
    tpu.vector_store %arg5[%c0_9, %c0_10], %9 {strides = array<i32>} : memref<8x128xf32, #tpu.memory_space<vmem>>, vector<8x128xf32>,
    return
  }
  func.func @transform_0(%arg0: i32) -> (i32, i32) {
    %c0_i32 = arith.constant 0 : i32
    %c0_i32_0 = arith.constant 0 : i32
    return %c0_i32, %arg0 : i32, i32
  }
  func.func @transform_1(%arg0: i32) -> (i32, i32) {
    %c0_i32 = arith.constant 0 : i32
    %c0_i32_0 = arith.constant 0 : i32
    return %c0_i32, %arg0 : i32, i32
  }
  func.func @transform_2(%arg0: i32) -> (i32, i32) {
    %c0_i32 = arith.constant 0 : i32
    %c0_i32_0 = arith.constant 0 : i32
    %c0_i32_1 = arith.constant 0 : i32
    return %c0_i32, %c0_i32_0 : i32, i32
  }
  func.func @transform_3(%arg0: i32) -> (i32, i32) {
    %c0_i32 = arith.constant 0 : i32
    %c0_i32_0 = arith.constant 0 : i32
    %c0_i32_1 = arith.constant 0 : i32
    return %c0_i32, %c0_i32_0 : i32, i32
  }
  func.func @transform_4(%arg0: i32) -> (i32, i32) {
    %c0_i32 = arith.constant 0 : i32
    %c0_i32_0 = arith.constant 0 : i32
    return %c0_i32, %arg0 : i32, i32
  }
}

</mosaic_0001>

<bundles_post_ra>
// kernel: tpu_custom_call.1
= control target key start
LH: loop header
LB: loop body
LE: loop exit
PB: predicated region body
PF: predicated region fallthrough
CT: control target
= control target key end

     0   :  { %vm38_vm0 = vcmask 261120   ;;  %s623_s0 = inlined_call_operand.vmem [shape: f32[32,128], index: 0, kind: input, shape index: {}]   ;;  %s624_s1 = inlined_call_operand.vmem [shape: f32[32,128], index: 1, kind: input, shape index: {}]   ;;  %s625_s2 = inlined_call_operand.vmem [shape: f32[128,32], index: 2, kind: input, shape index: {}]   ;;  %s626_s3 = inlined_call_operand.vmem [shape: f32[8,128], index: 3, kind: input, shape index: {}]   ;;  %s627_s4 = inlined_call_operand.hbm [shape: f32[8,128], index: 4, kind: output, shape index: {}]  }
   0x1   :  { %v37_v0 = vld [vmem:[%s623_s0 + $0x18] sm:$0xff]  ;;  %v36_v1 = vld [vmem:[%s623_s0 + $0x10] sm:$0xff]  ;;  %v18_v2 = vld [vmem:[%s625_s2] sm:$0xff] }
   0x2   :  { %392 = vmatprep.subr.mxu0 %v37_v0  ;;  %v35_v3 = vld [vmem:[%s623_s0 + $0x8] sm:$0xff]  ;;  %400 = vmatprep.mubr.msk.f32.mxu0 %vm38_vm0, %v18_v2  ;;  %v34_v4 = vld [vmem:[%s623_s0] sm:$0xff] }
   0x3   :  { %393 = vmatpush3.msra.mxu0 %v37_v0  ;;  %v19_v5 = vld [vmem:[%s625_s2 + $0x8] sm:$0xff] }
   0x4   :  { %394 = vmatprep.subr.mxu0 %v36_v1 }
   0x5   :  { %395 = vmatpush3.msra.mxu0 %v36_v1 }
   0x6   :  { %396 = vmatprep.subr.mxu0 %v35_v3 }
   0x7   :  { %397 = vmatpush3.msra.mxu0 %v35_v3 }
   0x8   :  { %9 = vsyncpa [#allocation3], 0  ;;  %398 = vmatprep.subr.mxu0 %v34_v4  ;;  %v20_v6 = vld [vmem:[%s625_s2 + $0x10] sm:$0xff]  ;;  %v21_v7 = vld [vmem:[%s625_s2 + $0x18] sm:$0xff]  ;;  %v484_v20 = vmov 0.0   ;;  %vm485_vm1 = vmmov 0  }
   0x9   :  { %399 = vmatpush3.msra.mxu0 %v34_v4  ;;  %v22_v8 = vld [vmem:[%s625_s2 + $0x20] sm:$0xff]  ;;  %v23_v9 = vld [vmem:[%s625_s2 + $0x28] sm:$0xff]  ;;  %v24_v10 = vld [vmem:[%s625_s2 + $0x30] sm:$0xff]  ;;  %424 = vmatprep.subr.mxu1 %v484_v20  ;;  %s486_s9 = smov [#allocation2]  }
   0xa   :  { %401 = vmatmul.mubr.msk.f32.vlgmr.msra.gmra.mxu0 %vm38_vm0, %v19_v5  ;;  %v25_v11 = vld [vmem:[%s625_s2 + $0x38] sm:$0xff]  ;;  %v26_v12 = vld [vmem:[%s625_s2 + $0x40] sm:$0xff]  ;;  %v27_v13 = vld [vmem:[%s625_s2 + $0x48] sm:$0xff]  ;;  %456 = vmatprep.mubr.msk.f32.mxu1 %vm485_vm1, %v484_v20  ;;  %s331_s10 = sshll.u32 %s486_s9, 4  ;;  %s332_s10 = int_to_ptr.vmem [resolvable:$true] %s331_s10 }
   0xb   :  { %403 = vmatprep.mubr.msk.f32.mxu0 %vm38_vm0, %v20_v6  ;;  %v28_v14 = vld [vmem:[%s625_s2 + $0x50] sm:$0xff]  ;;  %v29_v15 = vld [vmem:[%s625_s2 + $0x58] sm:$0xff]  ;;  %v30_v16 = vld [vmem:[%s625_s2 + $0x60] sm:$0xff]  ;;  %s462_s11 = scalar_lea.vmem %s332_s10, 128  ;;  %p467_p1 = scmp.lt.s32.totalorder %s332_s10, %s332_s10 }
   0xc   :  { %v31_v17 = vld [vmem:[%s625_s2 + $0x68] sm:$0xff]  ;;  %v32_v18 = vld [vmem:[%s625_s2 + $0x70] sm:$0xff]  ;;  %v33_v19 = vld [vmem:[%s625_s2 + $0x78] sm:$0xff]  ;;  %p463_p0 = scmp.ne.s32.totalorder %s332_s10, %s462_s11  ;;  %p468_p2 = scmp.lt.s32.totalorder %s462_s11, %s462_s11 }
   0xd   :  { %v235_v35 = vld [vmem:[%s624_s1 + $0x18] sm:$0xff]  ;;  %v234_v38 = vld [vmem:[%s624_s1 + $0x10] sm:$0xff]  ;;  %v233_v41 = vld [vmem:[%s624_s1 + $0x8] sm:$0xff] }
   0xe   :  { %404 = vmatmul.mubr.msk.f32.gmra.mxu0 %vm38_vm0, %v21_v7  ;;  %v232_v43 = vld [vmem:[%s624_s1] sm:$0xff]  ;;  %p469_p3 = por %p468_p2, %p467_p1 }
   0xf   :  { %406 = vmatprep.mubr.msk.f32.mxu0 %vm38_vm0, %v22_v8  ;;  %v252_v57 = vld [vmem:[%s626_s3] sm:$0xff] }
  0x10   :  { %p470_p4 = pnand %p469_p3, %p463_p0 }
  0x12   :  { %407 = vmatmul.mubr.msk.f32.gmra.mxu0 %vm38_vm0, %v23_v9 }
  0x13   :  { %409 = vmatprep.mubr.msk.f32.mxu0 %vm38_vm0, %v24_v10 }
  0x16   :  { %410 = vmatmul.mubr.msk.f32.gmra.mxu0 %vm38_vm0, %v25_v11 }
  0x17   :  { %412 = vmatprep.mubr.msk.f32.mxu0 %vm38_vm0, %v26_v12 }
  0x1a   :  { %413 = vmatmul.mubr.msk.f32.gmra.mxu0 %vm38_vm0, %v27_v13 }
  0x1b   :  { %415 = vmatprep.mubr.msk.f32.mxu0 %vm38_vm0, %v28_v14 }
  0x1e   :  { %416 = vmatmul.mubr.msk.f32.gmra.mxu0 %vm38_vm0, %v29_v15 }
  0x1f   :  { %418 = vmatprep.mubr.msk.f32.mxu0 %vm38_vm0, %v30_v16 }
  0x22   :  { %419 = vmatmul.mubr.msk.f32.gmra.mxu0 %vm38_vm0, %v31_v17 }
  0x23   :  { %421 = vmatprep.mubr.msk.f32.mxu0 %vm38_vm0, %v32_v18 }
  0x26   :  { %422 = vmatmul.mubr.msk.f32.gmra.mxu0 %vm38_vm0, %v33_v19 }
  0xca   :  { %v402_v21 = vpop.f32.mrf.mxu0 }
  0xcb   :  { %v237_v55 = vmul.f32 %v402_v21, %v233_v41 }
  0xcc   :  { %v153_v22 = vpop.f32.mrf.mxu0 }
  0xcd   :  { %v236_v56 = vmul.f32 %v232_v43, %v153_v22 }
  0xce   :  { %v405_v23 = vpop.f32.mrf.mxu0 }
  0xcf   :  { %v239_v53 = vmul.f32 %v405_v23, %v235_v35 }
  0xd0   :  { %v163_v24 = vpop.f32.mrf.mxu0 }
  0xd1   :  { %v238_v54 = vmul.f32 %v234_v38, %v163_v24 }
  0xd2   :  { %v408_v25 = vpop.f32.mrf.mxu0 }
  0xd3   :  { %v241_v51 = vmul.f32 %v408_v25, %v233_v41 }
  0xd4   :  { %v173_v26 = vpop.f32.mrf.mxu0 }
  0xd5   :  { %v240_v52 = vmul.f32 %v232_v43, %v173_v26 }
  0xd6   :  { %v411_v27 = vpop.f32.mrf.mxu0 }
  0xd7   :  { %v243_v49 = vmul.f32 %v411_v27, %v235_v35 }
  0xd8   :  { %v183_v28 = vpop.f32.mrf.mxu0 }
  0xd9   :  { %v242_v50 = vmul.f32 %v234_v38, %v183_v28 }
  0xda   :  { %v414_v29 = vpop.f32.mrf.mxu0 }
  0xdb   :  { %v245_v47 = vmul.f32 %v414_v29, %v233_v41 }
  0xdc   :  { %v193_v30 = vpop.f32.mrf.mxu0 }
  0xdd   :  { %v244_v48 = vmul.f32 %v232_v43, %v193_v30 }
  0xde   :  { %v417_v31 = vpop.f32.mrf.mxu0 }
  0xdf   :  { %v247_v45 = vmul.f32 %v417_v31, %v235_v35 }
  0xe0   :  { %v203_v32 = vpop.f32.mrf.mxu0 }
  0xe1   :  { %v246_v46 = vmul.f32 %v234_v38, %v203_v32 }
  0xe2   :  { %v420_v33 = vpop.f32.mrf.mxu0 }
  0xe3   :  { %v249_v42 = vmul.f32 %v420_v33, %v233_v41 }
  0xe4   :  { %v213_v34 = vpop.f32.mrf.mxu0 }
  0xe5   :  { %v248_v44 = vmul.f32 %v232_v43, %v213_v34 }
  0xe6   :  { %v423_v36 = vpop.f32.mrf.mxu0 }
  0xe7   :  { %v251_v37 = vmul.f32 %v423_v36, %v235_v35 }
  0xe8   :  { %v223_v39 = vpop.f32.mrf.mxu0 }
  0xe9   :  { %v250_v40 = vmul.f32 %v234_v38, %v223_v39  ;;  %425 = vmatpush3.msra.mxu1 %v251_v37 }
  0xea   :  { %426 = vmatprep.subr.mxu1 %v484_v20 }
  0xeb   :  { %427 = vmatpush3.msra.mxu1 %v250_v40 }
  0xec   :  { %428 = vmatprep.subr.mxu1 %v484_v20 }
  0xed   :  { %429 = vmatpush3.msra.mxu1 %v249_v42 }
  0xee   :  { %430 = vmatprep.subr.mxu1 %v484_v20 }
  0xef   :  { %431 = vmatpush3.msra.mxu1 %v248_v44 }
  0xf0   :  { %432 = vmatprep.subr.mxu1 %v484_v20 }
  0xf1   :  { %433 = vmatpush3.msra.mxu1 %v247_v45 }
  0xf2   :  { %434 = vmatprep.subr.mxu1 %v484_v20 }
  0xf3   :  { %435 = vmatpush3.msra.mxu1 %v246_v46 }
  0xf4   :  { %436 = vmatprep.subr.mxu1 %v484_v20 }
  0xf5   :  { %437 = vmatpush3.msra.mxu1 %v245_v47 }
  0xf6   :  { %438 = vmatprep.subr.mxu1 %v484_v20 }
  0xf7   :  { %439 = vmatpush3.msra.mxu1 %v244_v48 }
  0xf8   :  { %440 = vmatprep.subr.mxu1 %v484_v20 }
  0xf9   :  { %441 = vmatpush3.msra.mxu1 %v243_v49 }
  0xfa   :  { %442 = vmatprep.subr.mxu1 %v484_v20 }
  0xfb   :  { %443 = vmatpush3.msra.mxu1 %v242_v50 }
  0xfc   :  { %444 = vmatprep.subr.mxu1 %v484_v20 }
  0xfd   :  { %445 = vmatpush3.msra.mxu1 %v241_v51 }
  0xfe   :  { %446 = vmatprep.subr.mxu1 %v484_v20 }
  0xff   :  { %447 = vmatpush3.msra.mxu1 %v240_v52 }
 0x100   :  { %448 = vmatprep.subr.mxu1 %v484_v20 }
 0x101   :  { %449 = vmatpush3.msra.mxu1 %v239_v53 }
 0x102   :  { %450 = vmatprep.subr.mxu1 %v484_v20 }
 0x103   :  { %451 = vmatpush3.msra.mxu1 %v238_v54 }
 0x104   :  { %452 = vmatprep.subr.mxu1 %v484_v20 }
 0x105   :  { %453 = vmatpush3.msra.mxu1 %v237_v55 }
 0x106   :  { %454 = vmatprep.subr.mxu1 %v484_v20 }
 0x107   :  { %455 = vmatpush3.msra.mxu1 %v236_v56 }
 0x108   :  { %457 = vmatmul.mubr.f32.vlgmr.msra.gmra.mxu1 %v252_v57 }
 0x1c8   :  { %v319_v58 = vpop.f32.mrf.mxu1 }
 0x1c9   :  { %v323_v59 = vmax.f32 %v319_v58, 0.0 }
 0x1ca   :  { %v458_v60 = vpop.f32.mrf.mxu1 }
 0x1cb   :  { %324 = vst [vmem:[#allocation2] sm:$0xff] %v323_v59 }
 0x1cc   :  { %473 = shalt.err (!%p470_p4)
}
 0x1cd   :  { %334 = dma.vmem_to_hbm [thread:$0]  %s332_s10, 128, %s627_s4, [#allocation3]  }
 0x1ce   :  { %482 = dma.done.wait [#allocation3], 128  }
 0x1cf   :  { %483 = vsyncadd [#allocation3], 4294967168 }
 0x1d0   :  { %338 = vsyncpa [#allocation3], 1 }

</bundles_post_ra>
